<compile_context>
chip_gen: v7x
topology: tpu7x:2x2x1
jax: 0.10.0
libtpu: 0.0.40
codegen_flags: <defaults>
</compile_context>

<pallas_src>
import functools

import jax
import jax.numpy as jnp
from jax.experimental import pallas as pl
from jax.experimental.pallas import tpu as pltpu


def _round_up(x, m):
    return -(-x // m) * m


def _vmem_budget_bytes():
    """Scoped-VMEM budget with headroom, derived from the actual chip."""
    try:
        cap = pltpu.get_tpu_info().vmem_capacity_bytes
    except Exception:  # no TPU info available -> assume smallest (v7x, 64 MiB)
        cap = 64 * 1024 * 1024
    return max(32 * 1024 * 1024, min(100 * 1024 * 1024, (cap * 3) // 4))


def _market_encoder_kernel(x_ref, w_ref, b_ref, out_ref, acc_ref, *, seq_len, seq_tile):
    # x_ref: (bt, ts, H)   w_ref: (H, Dp) (pre-scaled by 1/S)
    # b_ref: (1, Dp) f32   out_ref: (bt, Dp)   acc_ref: (bt, H) f32 scratch
    s = pl.program_id(1)

    @pl.when(s == 0)
    def _init():
        acc_ref[...] = jnp.zeros_like(acc_ref)

    x = x_ref[...]
    if seq_len % seq_tile != 0:
        # Ragged last sequence tile: Pallas does not zero out-of-bounds reads,
        # so mask the tail sublanes before they can enter the accumulator.
        pos = s * seq_tile + jax.lax.broadcasted_iota(jnp.int32, (1, seq_tile, 1), 1)
        x = jnp.where(pos < seq_len, x, jnp.zeros_like(x))

    # Chunked f32 accumulation of the sequence sum (mean's 1/S lives in w).
    acc_ref[...] += jnp.sum(x, axis=1, dtype=jnp.float32)

    @pl.when(s == pl.num_programs(1) - 1)
    def _finalize():
        pooled = acc_ref[...].astype(w_ref.dtype)                       # (bt, H)
        out = jnp.dot(pooled, w_ref[...], preferred_element_type=jnp.float32)
        out_ref[...] = (out + b_ref[...]).astype(out_ref.dtype)


@functools.partial(jax.jit, static_argnames=("block_b",))
def market_encoder(market, weight, bias, *, block_b=128):
    """market: (B, S, H); weight: (D, H) [nn.Linear layout]; bias: (D,) -> (B, D)."""
    B, S, H = market.shape
    D, H2 = weight.shape
    assert H == H2, "hidden dims must match"
    out_dtype = market.dtype

    # Lane-dense padding only on the tiny weight / bias (output dim -> 128).
    Dp = _round_up(D, 128)

    # Pre-transpose and fold the mean's 1/S into the weight (one-time, tiny).
    w_t = (weight.T * (1.0 / S)).astype(weight.dtype)                   # (H, D)
    bias2d = bias.astype(jnp.float32).reshape(1, D)
    if Dp != D:
        w_t = jnp.pad(w_t, ((0, 0), (0, Dp - D)))
        bias2d = jnp.pad(bias2d, ((0, 0), (0, Dp - D)))

    # ---- Batch tiling: output blocks need bt % 8 == 0 unless bt == B; aim for
    # >= ~4 parallel steps so v7x's two TensorCores both get work.
    if B <= 8:
        bt = B
    else:
        bt = min(block_b, max(8, _round_up(pl.cdiv(B, 4), 8)))
    grid_b = pl.cdiv(B, bt)

    # ---- Sequence tiling: bound per-step VMEM independent of S.
    vmem_limit = int(_vmem_budget_bytes())
    x_item = jnp.dtype(market.dtype).itemsize
    w_item = jnp.dtype(w_t.dtype).itemsize
    o_item = jnp.dtype(out_dtype).itemsize
    fixed = 2 * (H * Dp + Dp) * w_item + 2 * bt * Dp * o_item + bt * H * 4
    avail = max(vmem_limit - fixed, 2 * 1024 * 1024)
    ts_cap = max(1, avail // (2 * bt * H * x_item))   # two x buffers in flight
    if ts_cap >= S or S <= 8:
        ts = S
    else:
        ts = max(8, min((ts_cap // 8) * 8, (S // 8) * 8))
    # When the batch grid has a single step, split S so the x DMA still
    # double-buffers against compute.
    if grid_b == 1 and S >= 16 and ts == S:
        ts = max(8, _round_up(pl.cdiv(S, 2), 8))
    grid_s = pl.cdiv(S, ts)

    kernel = functools.partial(_market_encoder_kernel, seq_len=S, seq_tile=ts)

    flops = 2 * B * H * Dp + B * S * H
    bytes_accessed = B * S * H * x_item + H * Dp * w_item + Dp * 4 + B * Dp * o_item

    out = pl.pallas_call(
        kernel,
        out_shape=jax.ShapeDtypeStruct((B, Dp), out_dtype),
        grid_spec=pltpu.PrefetchScalarGridSpec(
            num_scalar_prefetch=0,
            grid=(grid_b, grid_s),
            in_specs=[
                pl.BlockSpec((bt, ts, H), lambda i, s: (i, s, 0)),  # x tile (unpadded H)
                pl.BlockSpec((H, Dp), lambda i, s: (0, 0)),          # weight (constant)
                pl.BlockSpec((1, Dp), lambda i, s: (0, 0)),          # bias (constant)
            ],
            out_specs=pl.BlockSpec((bt, Dp), lambda i, s: (i, 0)),
            scratch_shapes=[pltpu.VMEM((bt, H), jnp.float32)],
        ),
        compiler_params=pltpu.CompilerParams(
            dimension_semantics=("parallel", "arbitrary"),
            vmem_limit_bytes=vmem_limit,
        ),
        cost_estimate=pl.CostEstimate(
            flops=int(flops), transcendentals=0, bytes_accessed=int(bytes_accessed)
        ),
    )(market, w_t, bias2d)

    # Slice off output-lane padding.
    return out[:, :D]


if __name__ == "__main__":
    # Deterministic synthetic parameters / inputs (no checkpoint loading).
    batch, seq, hidden_size, input_size = 2, 8, 32, 16

    key = jax.random.PRNGKey(0)
    k_x, k_w, k_b = jax.random.split(key, 3)

    market = jax.random.normal(k_x, (batch, seq, hidden_size), dtype=jnp.float32)
    # nn.Linear(hidden_size, input_size): weight (input_size, hidden_size), bias (input_size,)
    bound = 1.0 / (hidden_size ** 0.5)
    weight = jax.random.uniform(
        k_w, (input_size, hidden_size), dtype=jnp.float32, minval=-bound, maxval=bound
    )
    bias = jax.random.uniform(
        k_b, (input_size,), dtype=jnp.float32, minval=-bound, maxval=bound
    )

    pooled = market_encoder(market, weight, bias)
    pooled = jax.block_until_ready(pooled)

    # Pure-JAX reference (matmul-then-mean, as in the PyTorch module).
    h_ref = jnp.einsum("bsh,dh->bsd", market, weight) + bias[None, None, :]
    pooled_ref = h_ref.mean(axis=1)

    assert pooled.shape == (batch, input_size)
    assert jnp.allclose(pooled, pooled_ref, atol=1e-5, rtol=1e-5), "mismatch vs reference"

    print("KERNEL_OK")
</pallas_src>

<mosaic_0001>
module attributes {stable_mosaic.version = 11 : i64} {
  func.func @_market_encoder_kernel(%arg0: i32, %arg1: i32, %arg2: memref<2x8x32xf32, #tpu.memory_space<vmem>>, %arg3: memref<32x128xf32, #tpu.memory_space<vmem>>, %arg4: memref<1x128xf32, #tpu.memory_space<vmem>>, %arg5: memref<2x128xf32, #tpu.memory_space<vmem>>, %arg6: memref<2x32xf32, #tpu.memory_space<vmem>>) attributes {dimension_semantics = [#tpu.dimension_semantics<parallel>, #tpu.dimension_semantics<arbitrary>], iteration_bounds = array<i64: 1, 1>, scalar_prefetch = 0 : i64, scratch_operands = 1 : i64, tpu.core_type = #tpu.core_type<tc>, window_params = [{transform_indices = @transform_0, window_bounds = array<i64: 2, 8, 32>}, {pipeline_mode = #tpu.pipeline_mode<synchronous>, transform_indices = @transform_1, window_bounds = array<i64: 32, 128>}, {pipeline_mode = #tpu.pipeline_mode<synchronous>, transform_indices = @transform_2, window_bounds = array<i64: 1, 128>}, {transform_indices = @transform_3, window_bounds = array<i64: 2, 128>}]} {
    %c0_i32 = arith.constant 0 : i32
    %0 = arith.cmpi eq, %arg1, %c0_i32 : i32
    %1 = arith.extui %0 : i1 to i32
    %c0_i32_0 = arith.constant 0 : i32
    %2 = arith.cmpi ne, %1, %c0_i32_0 : i32
    scf.if %2 {
      %cst_9 = arith.constant 0.000000e+00 : f32
      %11 = vector.broadcast %cst_9 : f32 to vector<2x32xf32>
      %c0_10 = arith.constant 0 : index
      %c0_11 = arith.constant 0 : index
      %12 = vector.load %arg6[%c0_10, %c0_11] : memref<2x32xf32, #tpu.memory_space<vmem>>, vector<2x32xf32>
      tpu.vector_store %arg6[%c0_10, %c0_11], %11 {strides = array<i32>} : memref<2x32xf32, #tpu.memory_space<vmem>>, vector<2x32xf32>,
    } else {
    }
    %c0 = arith.constant 0 : index
    %c0_1 = arith.constant 0 : index
    %c0_2 = arith.constant 0 : index
    %3 = vector.load %arg2[%c0, %c0_1, %c0_2] : memref<2x8x32xf32, #tpu.memory_space<vmem>>, vector<2x8x32xf32>
    %c0_3 = arith.constant 0 : index
    %c0_4 = arith.constant 0 : index
    %4 = vector.load %arg6[%c0_3, %c0_4] : memref<2x32xf32, #tpu.memory_space<vmem>>, vector<2x32xf32>
    %cst = arith.constant dense<0.000000e+00> : vector<2x32xf32>
    %5 = vector.multi_reduction <add>, %3, %cst [1] : vector<2x8x32xf32> to vector<2x32xf32>
    %6 = arith.addf %4, %5 : vector<2x32xf32>
    %c0_5 = arith.constant 0 : index
    %c0_6 = arith.constant 0 : index
    %7 = vector.load %arg6[%c0_5, %c0_6] : memref<2x32xf32, #tpu.memory_space<vmem>>, vector<2x32xf32>
    tpu.vector_store %arg6[%c0_5, %c0_6], %6 {strides = array<i32>} : memref<2x32xf32, #tpu.memory_space<vmem>>, vector<2x32xf32>,
    %c0_i32_7 = arith.constant 0 : i32
    %8 = arith.cmpi eq, %arg1, %c0_i32_7 : i32
    %9 = arith.extui %8 : i1 to i32
    %c0_i32_8 = arith.constant 0 : i32
    %10 = arith.cmpi ne, %9, %c0_i32_8 : i32
    scf.if %10 {
      %c0_9 = arith.constant 0 : index
      %c0_10 = arith.constant 0 : index
      %11 = vector.load %arg6[%c0_9, %c0_10] : memref<2x32xf32, #tpu.memory_space<vmem>>, vector<2x32xf32>
      %c0_11 = arith.constant 0 : index
      %c0_12 = arith.constant 0 : index
      %12 = vector.load %arg3[%c0_11, %c0_12] : memref<32x128xf32, #tpu.memory_space<vmem>>, vector<32x128xf32>
      %cst_13 = arith.constant dense<0.000000e+00> : vector<2x128xf32>
      %13 = tpu.matmul %11, %12, %cst_13 {dimension_numbers = #tpu.dot_dimension_numbers<[1], [0], [0], [1], [0, 0, 1, 1], [], []>} : vector<2x32xf32>, vector<32x128xf32>, vector<2x128xf32> -> vector<2x128xf32>
      %c0_14 = arith.constant 0 : index
      %c0_15 = arith.constant 0 : index
      %14 = vector.load %arg4[%c0_14, %c0_15] : memref<1x128xf32, #tpu.memory_space<vmem>>, vector<1x128xf32>
      %15 = vector.broadcast %14 : vector<1x128xf32> to vector<2x128xf32>
      %16 = arith.addf %13, %15 : vector<2x128xf32>
      %c0_16 = arith.constant 0 : index
      %c0_17 = arith.constant 0 : index
      %17 = vector.load %arg5[%c0_16, %c0_17] : memref<2x128xf32, #tpu.memory_space<vmem>>, vector<2x128xf32>
      tpu.vector_store %arg5[%c0_16, %c0_17], %16 {strides = array<i32>} : memref<2x128xf32, #tpu.memory_space<vmem>>, vector<2x128xf32>,
    } else {
    }
    return
  }
  func.func @transform_0(%arg0: i32, %arg1: i32) -> (i32, i32, i32) {
    %c0_i32 = arith.constant 0 : i32
    %c0_i32_0 = arith.constant 0 : i32
    return %arg0, %arg1, %c0_i32 : i32, i32, i32
  }
  func.func @transform_1(%arg0: i32, %arg1: i32) -> (i32, i32) {
    %c0_i32 = arith.constant 0 : i32
    %c0_i32_0 = arith.constant 0 : i32
    %c0_i32_1 = arith.constant 0 : i32
    return %c0_i32, %c0_i32_0 : i32, i32
  }
  func.func @transform_2(%arg0: i32, %arg1: i32) -> (i32, i32) {
    %c0_i32 = arith.constant 0 : i32
    %c0_i32_0 = arith.constant 0 : i32
    %c0_i32_1 = arith.constant 0 : i32
    return %c0_i32, %c0_i32_0 : i32, i32
  }
  func.func @transform_3(%arg0: i32, %arg1: i32) -> (i32, i32) {
    %c0_i32 = arith.constant 0 : i32
    %c0_i32_0 = arith.constant 0 : i32
    return %arg0, %c0_i32 : i32, i32
  }
}

</mosaic_0001>

<bundles_post_ra>
// kernel: market_encoder.1
= control target key start
LH: loop header
LB: loop body
LE: loop exit
PB: predicated region body
PF: predicated region fallthrough
CT: control target
= control target key end

     0   :  { %vm19_vm0 = vcmask 254976   ;;  %v202_v3 = vmov 0.0|0.0   ;;  %v203_v6 = vmov 0.0   ;;  %vm24_vm1 = vcmask 261120   ;;  %s264_s0 = inlined_call_operand.vmem [shape: f32[2,8,32], index: 0, kind: input, shape index: {}]   ;;  %s265_s1 = inlined_call_operand.vmem [shape: f32[32,128], index: 1, kind: input, shape index: {}]   ;;  %s266_s2 = inlined_call_operand.vmem [shape: f32[1,128], index: 2, kind: input, shape index: {}]   ;;  %s267_s3 = inlined_call_operand.hbm [shape: f32[2,128], index: 3, kind: output, shape index: {}]  }
   0x1   :  { %v51_v0 = vld [vmem:[%s265_s1] sm:$0xff]  ;;  %v52_v1 = vld [vmem:[%s265_s1 + $0x8] sm:$0xff]  ;;  %v53_v2 = vld [vmem:[%s265_s1 + $0x10] sm:$0xff]  ;;  %168 = vmatprep.subr.bf16.mxu0 %v202_v3  ;;  %20 = vst.msk [vmem:[#allocation2] sm:$0x3] %vm19_vm0, %v203_v6  ;;  %vm204_vm2 = vmmov 0  }
   0x2   :  { %v169_v4 = vpack.c.bf16 %v52_v1, %v51_v0  ;;  %v54_v5 = vld [vmem:[%s265_s1 + $0x18] sm:$0xff]  ;;  %v21_v7 = vld [vmem:[%s264_s0] sm:$0xff]  ;;  %v22_v8 = vld [vmem:[%s264_s0 + $0x8] sm:$0xff]  ;;  %165 = vmatprep.mubr.msk.f32.mxu0 %vm204_vm2, %v203_v6 }
   0x3   :  { %v25_v9 = vsel %vm24_vm1, %v21_v7, 0.0  ;;  %v32_v10 = vsel %vm24_vm1, %v22_v8, 0.0 }
   0x4   :  { %8 = vsyncpa [#allocation4], 0  ;;  %170 = vmatpush3.bf16.msra.mxu0 %v169_v4  ;;  %v172_v11 = vpack.c.bf16 %v54_v5, %v53_v2  ;;  %v26_v12 = vrot.slane %v25_v9, 4  ;;  %v33_v13 = vrot.slane %v32_v10, 4  ;;  %vm41_vm3 = vcmask 1041409   ;;  %s205_s24 = smov [#allocation3]  }
   0x5   :  { %171 = vmatprep.subr.bf16.mxu0 %v202_v3  ;;  %v150_v28 = vld [vmem:[%s266_s2] ss:$0 sm:$0xff]  ;;  %s142_s25 = sshll.u32 %s205_s24, 4  ;;  %s143_s25 = int_to_ptr.vmem [resolvable:$true] %s142_s25 }
   0x6   :  { %v27_v14 = vadd.f32 %v26_v12, %v25_v9  ;;  %v34_v15 = vadd.f32 %v33_v13, %v32_v10  ;;  %s178_s26 = scalar_lea.vmem %s143_s25, 32  ;;  %p183_p1 = scmp.lt.s32.totalorder %s143_s25, %s143_s25 }
   0x7   :  { %p179_p0 = scmp.ne.s32.totalorder %s143_s25, %s178_s26  ;;  %p184_p2 = scmp.lt.s32.totalorder %s178_s26, %s178_s26 }
   0x8   :  { %173 = vmatpush3.bf16.msra.mxu0 %v172_v11  ;;  %v28_v16 = vrot.slane %v27_v14, 2  ;;  %v35_v17 = vrot.slane %v34_v15, 2  ;;  %v23_v22 = vld [vmem:[#allocation2] sm:$0x3] }
   0x9   :  { %p185_p3 = por %p184_p2, %p183_p1 }
   0xa   :  { %v29_v18 = vadd.f32 %v28_v16, %v27_v14  ;;  %v36_v19 = vadd.f32 %v35_v17, %v34_v15 }
   0xb   :  { %p186_p4 = pnand %p185_p3, %p179_p0 }
   0xc   :  { %v30_v20 = vrot.slane %v29_v18, 1  ;;  %v37_v21 = vrot.slane %v36_v19, 1 }
   0xe   :  { %v31_v23 = vadd.f32 %v30_v20, %v29_v18  ;;  %v38_v24 = vadd.f32 %v37_v21, %v36_v19 }
  0x10   :  { %v42_v25 = vsel %vm41_vm3, %v38_v24, %v31_v23 }
  0x11   :  { %v44_v26 = vadd.f32 %v42_v25, %v23_v22 }
  0x13   :  { %46 = vst.msk [vmem:[#allocation2] sm:$0x3] %vm19_vm0, %v44_v26 }
  0x1a   :  { %v50_v27 = vld [vmem:[#allocation2] sm:$0x3] }
  0x1b   :  { %166 = vmatmul.mubr.msk.f32.vlgmr.msra.gmra.mrb[0].mxu0 %vm24_vm1, %v50_v27 }
  0xee   :  { %v131_v29 = vpop.f32.mrb[0].mxu0 }
  0xef   :  { %v132_v30 = vadd.f32 %v150_v28, %v131_v29  ;;  %v167_v31 = vpop.f32.mrb[1].mxu0 }
  0xf1   :  { %135 = vst [vmem:[#allocation3] sm:$0x3] %v132_v30 }
  0xf2   :  { %189 = shalt.err (!%p186_p4)
}
  0xf3   :  { %s190_s29 = scalar_lea.hbm %s267_s3, 32 }
  0xf4   :  { %p191_p5 = scmp.ne.s32.totalorder %s267_s3, %s190_s29  ;;  %p194_p6 = scmp.lt.u32.totalorder %s190_s29, %s267_s3 }
  0xf6   :  { %p196_p7 = pnand %p194_p6, %p191_p5 }
  0xf8   :  { %199 = shalt.err (!%p196_p7)
}
  0xf9   :  { %145 = dma.vmem_to_hbm [thread:$0]  %s143_s25, 32, %s267_s3, [#allocation4]  }
  0xfa   :  { %200 = dma.done.wait [#allocation4], 32  }
  0xfb   :  { %201 = vsyncadd [#allocation4], 4294967264 }
  0xfc   :  { %149 = vsyncpa [#allocation4], 1 }

</bundles_post_ra>
